<compile_context>
chip_gen: v6e
topology: v6e:2x2x1
jax: 0.10.0
libtpu: 0.0.40
codegen_flags: <defaults>
</compile_context>

<pallas_src>
import functools

import jax
import jax.numpy as jnp
from jax import lax
from jax.experimental import pallas as pl
from jax.experimental.pallas import tpu as pltpu


def _dice_sums_kernel(x_ref, t_ref, o_ref, *, s_total, ts, need_mask):
    """Accumulate per-row [intersection, union] sums over spatial tiles.

    x_ref, t_ref : (row_block, ts) VMEM tiles (native input dtype)
    o_ref        : (row_block, 2)  f32 accumulator, resident across the
                   spatial ("arbitrary") grid axis.
    """
    k = pl.program_id(1)  # spatial tile index (reduction axis, last)

    @pl.when(k == 0)
    def _():
        o_ref[...] = jnp.zeros_like(o_ref)

    x = x_ref[...].astype(jnp.float32)
    t = t_ref[...].astype(jnp.float32)

    if need_mask:
        # Zero out-of-range lanes of the last (partial) spatial tile.
        rem = s_total - k * ts
        col = lax.broadcasted_iota(jnp.int32, x.shape, 1)
        valid = col < rem
        x = jnp.where(valid, x, 0.0)
        t = jnp.where(valid, t, 0.0)

    o_ref[:, 0:1] += jnp.sum(x * t, axis=1, keepdims=True)  # intersection
    o_ref[:, 1:2] += jnp.sum(x + t, axis=1, keepdims=True)  # sum(x)+sum(t)


def dice_coef(inp, target, *, vmem_block_bytes=2 * 1024 * 1024):
    """JAX/Pallas equivalent of the PyTorch dice_coef.forward."""
    assert inp.shape == target.shape and inp.ndim == 5, "expected 5D NCDHW inputs"
    n, c = inp.shape[0], inp.shape[1]
    nc = n * c
    s = inp.shape[2] * inp.shape[3] * inp.shape[4]

    # No-copy flatten; keep native dtype (cast to f32 happens inside kernel).
    x = inp.reshape(nc, s)
    t = target.reshape(nc, s)
    dtype_bytes = jnp.dtype(x.dtype).itemsize

    # Row (N*C) blocking: small NC -> one full-dim block; large NC -> blocks
    # of 256 rows (multiple of 8 sublanes and 128 lanes) so the "parallel"
    # axis can be sharded across TensorCores and VMEM per block stays bounded.
    row_block = nc if nc <= 256 else 256
    nr = pl.cdiv(nc, row_block)

    # Spatial tile sized to the per-buffer VMEM budget
    # (2 inputs x 2 pipeline buffers x row_block x ts x dtype_bytes total).
    max_lanes = max(128, vmem_block_bytes // (dtype_bytes * row_block))
    if s <= max_lanes:
        ts = s                       # full spatial extent in one tile
    else:
        ts = (max_lanes // 128) * 128
    ns = pl.cdiv(s, ts)
    need_mask = (s % ts) != 0        # static: emit tail masking only if needed

    kernel = functools.partial(
        _dice_sums_kernel, s_total=s, ts=ts, need_mask=need_mask)

    sums = pl.pallas_call(
        kernel,
        out_shape=jax.ShapeDtypeStruct((nc, 2), jnp.float32),
        grid_spec=pltpu.PrefetchScalarGridSpec(
            num_scalar_prefetch=0,
            grid=(nr, ns),
            in_specs=[
                pl.BlockSpec((row_block, ts), lambda j, k: (j, k)),
                pl.BlockSpec((row_block, ts), lambda j, k: (j, k)),
            ],
            out_specs=pl.BlockSpec((row_block, 2), lambda j, k: (j, 0)),
        ),
        compiler_params=pltpu.CompilerParams(
            dimension_semantics=("parallel", "arbitrary"),
            vmem_limit_bytes=32 * 1024 * 1024,
        ),
    )(x, t)

    smooth = 1e-06
    inter = sums[:, 0].reshape(n, c)
    union = sums[:, 1].reshape(n, c)
    sample_dices = (2.0 * inter + smooth) / (union + smooth)
    dices = jnp.mean(sample_dices, axis=0)   # mean over batch -> per channel
    return jnp.mean(dices)                   # mean over channels -> scalar


def _reference(inp, target):
    smooth = 1e-06
    inp = inp.astype(jnp.float32)
    target = target.astype(jnp.float32)
    inter = jnp.sum(inp * target, axis=(2, 3, 4))
    union = jnp.sum(inp, axis=(2, 3, 4)) + jnp.sum(target, axis=(2, 3, 4))
    sample = (2.0 * inter + smooth) / (union + smooth)
    return jnp.mean(jnp.mean(sample, axis=0))


if __name__ == "__main__":
    key = jax.random.PRNGKey(0)
    k1, k2 = jax.random.split(key)
    # Small 5D shapes: (N, C, D, H, W)
    shape = (2, 4, 4, 8, 8)
    pred = jax.random.uniform(k1, shape, dtype=jnp.float32)          # soft predictions
    tgt = (jax.random.uniform(k2, shape, dtype=jnp.float32) > 0.5).astype(jnp.float32)

    out = dice_coef(pred, tgt)
    out = jax.block_until_ready(out)

    ref = jax.block_until_ready(_reference(pred, tgt))
    assert jnp.allclose(out, ref, rtol=1e-5, atol=1e-6), (out, ref)
    print("KERNEL_OK")
</pallas_src>

<mosaic_0001>
module attributes {stable_mosaic.version = 11 : i64} {
  func.func @_dice_sums_kernel(%arg0: i32, %arg1: i32, %arg2: memref<8x256xf32, #tpu.memory_space<vmem>>, %arg3: memref<8x256xf32, #tpu.memory_space<vmem>>, %arg4: memref<8x2xf32, #tpu.memory_space<vmem>>) attributes {dimension_semantics = [#tpu.dimension_semantics<parallel>, #tpu.dimension_semantics<arbitrary>], iteration_bounds = array<i64: 1, 1>, scalar_prefetch = 0 : i64, scratch_operands = 0 : i64, tpu.core_type = #tpu.core_type<tc>, window_params = [{transform_indices = @transform_0, window_bounds = array<i64: 8, 256>}, {transform_indices = @transform_1, window_bounds = array<i64: 8, 256>}, {transform_indices = @transform_2, window_bounds = array<i64: 8, 2>}]} {
    %c0_i32 = arith.constant 0 : i32
    %0 = arith.cmpi eq, %arg1, %c0_i32 : i32
    %1 = arith.extui %0 : i1 to i32
    %c0_i32_0 = arith.constant 0 : i32
    %2 = arith.cmpi ne, %1, %c0_i32_0 : i32
    scf.if %2 {
      %cst_12 = arith.constant 0.000000e+00 : f32
      %17 = vector.broadcast %cst_12 : f32 to vector<8x2xf32>
      %c0_13 = arith.constant 0 : index
      %c0_14 = arith.constant 0 : index
      %18 = vector.load %arg4[%c0_13, %c0_14] : memref<8x2xf32, #tpu.memory_space<vmem>>, vector<8x2xf32>
      tpu.vector_store %arg4[%c0_13, %c0_14], %17 {strides = array<i32>} : memref<8x2xf32, #tpu.memory_space<vmem>>, vector<8x2xf32>,
    } else {
    }
    %c0 = arith.constant 0 : index
    %c0_1 = arith.constant 0 : index
    %3 = vector.load %arg2[%c0, %c0_1] : memref<8x256xf32, #tpu.memory_space<vmem>>, vector<8x256xf32>
    %c0_2 = arith.constant 0 : index
    %c0_3 = arith.constant 0 : index
    %4 = vector.load %arg3[%c0_2, %c0_3] : memref<8x256xf32, #tpu.memory_space<vmem>>, vector<8x256xf32>
    %c0_4 = arith.constant 0 : index
    %c0_5 = arith.constant 0 : index
    %5 = vector.load %arg4[%c0_4, %c0_5] : memref<8x2xf32, #tpu.memory_space<vmem>>, vector<8x1xf32>
    %6 = arith.mulf %3, %4 : vector<8x256xf32>
    %cst = arith.constant dense<0.000000e+00> : vector<8xf32>
    %7 = vector.multi_reduction <add>, %6, %cst [1] : vector<8x256xf32> to vector<8xf32>
    %8 = vector.shape_cast %7 : vector<8xf32> to vector<8x1xf32>
    %9 = arith.addf %5, %8 : vector<8x1xf32>
    %c0_6 = arith.constant 0 : index
    %c0_7 = arith.constant 0 : index
    %10 = vector.load %arg4[%c0_6, %c0_7] : memref<8x2xf32, #tpu.memory_space<vmem>>, vector<8x1xf32>
    tpu.vector_store %arg4[%c0_6, %c0_7], %9 {strides = array<i32>} : memref<8x2xf32, #tpu.memory_space<vmem>>, vector<8x1xf32>,
    %c0_8 = arith.constant 0 : index
    %c1 = arith.constant 1 : index
    %11 = vector.load %arg4[%c0_8, %c1] : memref<8x2xf32, #tpu.memory_space<vmem>>, vector<8x1xf32>
    %12 = arith.addf %3, %4 : vector<8x256xf32>
    %cst_9 = arith.constant dense<0.000000e+00> : vector<8xf32>
    %13 = vector.multi_reduction <add>, %12, %cst_9 [1] : vector<8x256xf32> to vector<8xf32>
    %14 = vector.shape_cast %13 : vector<8xf32> to vector<8x1xf32>
    %15 = arith.addf %11, %14 : vector<8x1xf32>
    %c0_10 = arith.constant 0 : index
    %c1_11 = arith.constant 1 : index
    %16 = vector.load %arg4[%c0_10, %c1_11] : memref<8x2xf32, #tpu.memory_space<vmem>>, vector<8x1xf32>
    tpu.vector_store %arg4[%c0_10, %c1_11], %15 {strides = array<i32>} : memref<8x2xf32, #tpu.memory_space<vmem>>, vector<8x1xf32>,
    return
  }
  func.func @transform_0(%arg0: i32, %arg1: i32) -> (i32, i32) {
    %c0_i32 = arith.constant 0 : i32
    return %arg0, %arg1 : i32, i32
  }
  func.func @transform_1(%arg0: i32, %arg1: i32) -> (i32, i32) {
    %c0_i32 = arith.constant 0 : i32
    return %arg0, %arg1 : i32, i32
  }
  func.func @transform_2(%arg0: i32, %arg1: i32) -> (i32, i32) {
    %c0_i32 = arith.constant 0 : i32
    %c0_i32_0 = arith.constant 0 : i32
    return %arg0, %c0_i32 : i32, i32
  }
}

</mosaic_0001>

<bundles_post_ra>
// kernel: tpu_custom_call.1
= control target key start
LH: loop header
LB: loop body
LE: loop exit
PB: predicated region body
PF: predicated region fallthrough
CT: control target
= control target key end

     0   :  { %7 = vsyncpa [#allocation3], 0  ;;  %s155_s0 = inlined_call_operand.hbm [shape: f32[8,256], index: 0, kind: input, shape index: {}]   ;;  %s156_s1 = inlined_call_operand.hbm [shape: f32[8,256], index: 1, kind: input, shape index: {}]   ;;  %s157_s2 = inlined_call_operand.vmem [shape: f32[8,2], index: 2, kind: output, shape index: {}]  }
   0x1   :  { %8 = vsyncpa [#allocation5], 0  ;;  %s116_s9 = smov [#allocation2]   ;;  %s117_s11 = smov [#allocation4]  }
   0x2   :  { %s15_s10 = sshll.u32 %s116_s9, 4  ;;  %s25_s12 = sshll.u32 %s117_s11, 4  ;;  %s16_s10 = int_to_ptr.vmem [resolvable:$true] %s15_s10  ;;  %s26_s12 = int_to_ptr.vmem [resolvable:$true] %s25_s12 }
   0x3   :  { %s80_s13 = scalar_lea.vmem %s16_s10, 256  ;;  %p85_p1 = scmp.lt.s32.totalorder %s16_s10, %s16_s10 }
   0x4   :  { %p81_p0 = scmp.ne.s32.totalorder %s16_s10, %s80_s13  ;;  %p86_p2 = scmp.lt.s32.totalorder %s80_s13, %s80_s13 }
   0x6   :  { %p87_p3 = por %p86_p2, %p85_p1 }
   0x8   :  { %p88_p4 = pnand %p87_p3, %p81_p0 }
   0xa   :  { %91 = shalt.err (!%p88_p4)
}
   0xb   :  { %18 = dma.hbm_to_vmem [thread:$0]  %s155_s0, 256, %s16_s10, [#allocation3]  }
   0xc   :  { %s100_s16 = scalar_lea.vmem %s26_s12, 256  ;;  %p105_p6 = scmp.lt.s32.totalorder %s26_s12, %s26_s12 }
   0xd   :  { %p101_p5 = scmp.ne.s32.totalorder %s26_s12, %s100_s16  ;;  %p106_p7 = scmp.lt.s32.totalorder %s100_s16, %s100_s16 }
   0xf   :  { %p107_p8 = por %p106_p7, %p105_p6 }
  0x11   :  { %p108_p9 = pnand %p107_p8, %p101_p5 }
  0x13   :  { %111 = shalt.err (!%p108_p9)
}
  0x14   :  { %28 = dma.hbm_to_vmem [thread:$0]  %s156_s1, 256, %s26_s12, [#allocation5]  }
  0x15   :  { %112 = dma.done.wait [#allocation3], 256  }
  0x16   :  { %113 = vsyncadd [#allocation3], 4294967040 }
  0x17   :  { %114 = dma.done.wait [#allocation5], 256  }
  0x18   :  { %115 = vsyncadd [#allocation5], 4294967040  ;;  %vm39_vm0 = vcmask 15360   ;;  %v118_v0 = vmov 0.0   ;;  %v41_v1 = vld [vmem:[#allocation2] sm:$0xff]  ;;  %v42_v2 = vld [vmem:[#allocation2 + $0x8] sm:$0xff] }
  0x19   :  { %40 = vst.msk [vmem:[%s157_s2] sm:$0xff] %vm39_vm0, %v118_v0  ;;  %v43_v3 = vld [vmem:[#allocation4] sm:$0xff]  ;;  %v44_v4 = vld [vmem:[#allocation4 + $0x8] sm:$0xff]  ;;  %vm52_vm1 = vcmask 7168   ;;  %vm61_vm2 = vcmask 15368  }
  0x1a   :  { %v46_v5 = vmul.f32 %v43_v3, %v41_v1  ;;  %v47_v6 = vmul.f32 %v44_v4, %v42_v2  ;;  %v55_v7 = vadd.f32 %v43_v3, %v41_v1  ;;  %v56_v8 = vadd.f32 %v44_v4, %v42_v2 }
  0x1c   :  { %v48_v9 = vadd.f32 %v47_v6, %v46_v5  ;;  %v57_v10 = vadd.f32 %v56_v8, %v55_v7 }
  0x1e   :  { %49 = vadd.xlane.f32.xlu0 %v48_v9 }
  0x20   :  { %v45_v11 = vld [vmem:[%s157_s2] sm:$0xff] }
  0x22   :  { %58 = vadd.xlane.f32.xlu0 %v57_v10 }
  0xa7   :  { %v50_v12 = vpop.xlane.xlu0 %49 }
  0xa8   :  { %v51_v13 = vadd.f32 %v50_v12, %v45_v11 }
  0xaa   :  { %53 = vst.msk [vmem:[%s157_s2] sm:$0xff] %vm52_vm1, %v51_v13 }
  0xab   :  { %v59_v14 = vpop.xlane.xlu0 %58 }
  0xb1   :  { %v54_v15 = vld [vmem:[%s157_s2] sm:$0xff] }
  0xb2   :  { %v60_v16 = vadd.f32 %v59_v14, %v54_v15 }
  0xb4   :  { %62 = vst.msk [vmem:[%s157_s2] sm:$0xff] %vm61_vm2, %v60_v16 }
  0xb5   :  { %67 = vsyncpa [#allocation3], 1 }
  0xb6   :  { %68 = vsyncpa [#allocation5], 1 }

</bundles_post_ra>
